<compile_context>
chip_gen: v6e
topology: v6e:2x2x1
jax: 0.10.0
libtpu: 0.0.40
codegen_flags: <defaults>
</compile_context>

<pallas_src>
import functools

import jax
import jax.numpy as jnp
from jax import lax
from jax.experimental import pallas as pl
from jax.experimental.pallas import tpu as pltpu


def _round_up(x, m):
    return ((x + m - 1) // m) * m


def _pick_tile(dim, max_tile, align):
    """Return (tile, padded_dim).

    Preference order: (a) the full dim when it fits max_tile (full-dim blocks
    are always legal and need no padding); (b) the largest `align`-multiple
    <= max_tile that divides `dim` exactly (no padding); (c) max_tile with
    zero padding as a last resort (exact: pads are zeros / sliced off).
    """
    if dim <= max_tile:
        return dim, dim
    t = (max_tile // align) * align
    while t >= align:
        if dim % t == 0:
            return t, dim
        t -= align
    t = (max_tile // align) * align
    return t, _round_up(dim, t)


def _linear_kernel(x_ref, w_ref, b_ref, o_ref, *, x_strip, tk):
    # x_ref: [tm, tk]  (or [tm, Kp] resident strip when x_strip=True)
    # w_ref: [tn, tk]  -- PyTorch [D_out, D_in] layout, never transposed
    # b_ref: [1, tn]   (f32)
    # o_ref: [tm, tn]  (f32) -- VMEM-resident across the K axis; used as the
    #                   accumulator directly (no separate scratch).
    k = pl.program_id(2)

    @pl.when(k == 0)
    def _():
        o_ref[...] = jnp.zeros_like(o_ref)

    if x_strip:
        k0 = pl.multiple_of(k * tk, 128)
        x_tile = x_ref[:, pl.ds(k0, tk)]
    else:
        x_tile = x_ref[...]

    # Contract K of x (axis 1) with K of weight (axis 1): y = x @ W.T without
    # materializing a transpose of the weight; f32 MXU accumulation.
    o_ref[...] += lax.dot_general(
        x_tile,
        w_ref[...],
        dimension_numbers=(((1,), (1,)), ((), ())),
        preferred_element_type=jnp.float32,
    )

    @pl.when(k == pl.num_programs(2) - 1)
    def _():
        o_ref[...] += b_ref[...]


def single_layer_net(x, weight, bias, *, compute_dtype=jnp.bfloat16,
                     max_tm=256, max_tn=1024, max_tk=1024):
    """Forward pass of SingleLayerNet: fc1(x) = x @ weight.T + bias.

    x:      [B, D_in]
    weight: [D_out, D_in] (PyTorch convention, kept un-transposed)
    bias:   [D_out]
    returns [B, D_out] float32
    """
    B, D_in = x.shape
    D_out, D_in2 = weight.shape
    assert D_in == D_in2, (x.shape, weight.shape)
    out_dtype = jnp.float32

    # MXU-native compute dtype for the streamed operands (f32 accumulation in
    # the kernel). Halves the HBM bytes streamed for f32 inputs.
    if x.dtype != compute_dtype:
        x = x.astype(compute_dtype)
    if weight.dtype != compute_dtype:
        weight = weight.astype(compute_dtype)
    bias = bias.astype(jnp.float32)

    # --- tile selection (prefers no padding) ---
    tm, Bp = _pick_tile(B, max_tm, 8)
    # v7x: with a single M block, keep >= 2 blocks on the "parallel" N axis so
    # both TensorCores get work.  No-op for small D_out and on v5e/v6e.
    if Bp // tm == 1 and D_out >= 256:
        max_tn = min(max_tn, max(128, (D_out // 2) // 128 * 128))
    tn, Np = _pick_tile(D_out, max_tn, 128)
    tk, Kp = _pick_tile(D_in, max_tk, 128)

    # --- zero padding only when a dim could not be tiled exactly ---
    if Bp != B or Kp != D_in:
        x = jnp.pad(x, ((0, Bp - B), (0, Kp - D_in)))
    if Np != D_out or Kp != D_in:
        weight = jnp.pad(weight, ((0, Np - D_out), (0, Kp - D_in)))
    b2 = bias.reshape(1, D_out)
    if Np != D_out:
        b2 = jnp.pad(b2, ((0, 0), (0, Np - D_out)))

    grid = (Bp // tm, Np // tn, Kp // tk)
    nj, nk = grid[1], grid[2]

    # Keep the whole (tm, Kp) x strip resident when re-reads across the N axis
    # would otherwise occur and the strip fits comfortably in VMEM.
    x_bytes = jnp.dtype(compute_dtype).itemsize
    x_strip = (nk > 1) and (nj > 1) and (tm * Kp * x_bytes <= (8 << 20))

    if x_strip:
        x_spec = pl.BlockSpec((tm, Kp), lambda i, j, k: (i, 0))
        x_buf = tm * Kp * x_bytes
    else:
        x_spec = pl.BlockSpec((tm, tk), lambda i, j, k: (i, k))
        x_buf = tm * tk * x_bytes

    # Explicit scoped-VMEM budget (double-buffered inputs/outputs).
    o_bytes = jnp.dtype(out_dtype).itemsize
    est = 2 * (x_buf + tn * tk * x_bytes + tn * 4 + tm * tn * o_bytes)
    vmem_limit = int(min(max(2 * est + (4 << 20), 32 << 20), 64 << 20))

    kernel = functools.partial(_linear_kernel, x_strip=x_strip, tk=tk)

    out = pl.pallas_call(
        kernel,
        out_shape=jax.ShapeDtypeStruct((Bp, Np), out_dtype),
        grid=grid,
        in_specs=[
            x_spec,                                           # x tile / strip
            pl.BlockSpec((tn, tk), lambda i, j, k: (j, k)),   # weight tile (no transpose)
            pl.BlockSpec((1, tn), lambda i, j, k: (0, j)),    # bias slice for this j
        ],
        out_specs=pl.BlockSpec((tm, tn), lambda i, j, k: (i, j)),
        compiler_params=pltpu.CompilerParams(
            dimension_semantics=("parallel", "parallel", "arbitrary"),
            vmem_limit_bytes=vmem_limit,
        ),
    )(x, weight, b2)

    if Bp != B or Np != D_out:
        out = out[:B, :D_out]
    return out


if __name__ == "__main__":
    # Small shapes consistent with a single nn.Linear(input_size, output_size).
    B, D_in, D_out = 8, 32, 16

    key = jax.random.PRNGKey(0)
    k_x, k_w, k_b = jax.random.split(key, 3)

    x = jax.random.normal(k_x, (B, D_in), dtype=jnp.float32)
    # Mirrors nn.init.normal_(weight, 0.0, 1.0); bias uses PyTorch's default
    # U(-1/sqrt(fan_in), 1/sqrt(fan_in)).
    weight = jax.random.normal(k_w, (D_out, D_in), dtype=jnp.float32)
    bound = 1.0 / jnp.sqrt(D_in)
    bias = jax.random.uniform(
        k_b, (D_out,), dtype=jnp.float32, minval=-bound, maxval=bound
    )

    out = single_layer_net(x, weight, bias)
    out = jax.block_until_ready(out)
    assert out.shape == (B, D_out)
    assert out.dtype == jnp.float32

    # Reference with the same bf16-input / f32-accumulation semantics.
    ref_bf16 = (
        jnp.dot(
            x.astype(jnp.bfloat16),
            weight.astype(jnp.bfloat16).T,
            preferred_element_type=jnp.float32,
        )
        + bias
    )
    assert jnp.allclose(out, ref_bf16, atol=2e-2, rtol=2e-2)

    # Loose sanity check against the full-f32 PyTorch-equivalent reference
    # (inputs are rounded to bf16, accumulation is f32).
    ref_f32 = x @ weight.T + bias
    assert jnp.allclose(out, ref_f32, atol=2.5e-1, rtol=5e-2)

    print("KERNEL_OK")
</pallas_src>

<mosaic_0001>
module attributes {stable_mosaic.version = 11 : i64} {
  func.func @_linear_kernel(%arg0: i32, %arg1: i32, %arg2: i32, %arg3: memref<8x32xbf16, #tpu.memory_space<vmem>>, %arg4: memref<16x32xbf16, #tpu.memory_space<vmem>>, %arg5: memref<1x16xf32, #tpu.memory_space<vmem>>, %arg6: memref<8x16xf32, #tpu.memory_space<vmem>>) attributes {dimension_semantics = [#tpu.dimension_semantics<parallel>, #tpu.dimension_semantics<parallel>, #tpu.dimension_semantics<arbitrary>], iteration_bounds = array<i64: 1, 1, 1>, scalar_prefetch = 0 : i64, scratch_operands = 0 : i64, tpu.core_type = #tpu.core_type<tc>, window_params = [{transform_indices = @transform_0, window_bounds = array<i64: 8, 32>}, {transform_indices = @transform_1, window_bounds = array<i64: 16, 32>}, {transform_indices = @transform_2, window_bounds = array<i64: 1, 16>}, {transform_indices = @transform_3, window_bounds = array<i64: 8, 16>}]} {
    %c0_i32 = arith.constant 0 : i32
    %0 = arith.cmpi eq, %arg2, %c0_i32 : i32
    %1 = arith.extui %0 : i1 to i32
    %c0_i32_0 = arith.constant 0 : i32
    %2 = arith.cmpi ne, %1, %c0_i32_0 : i32
    scf.if %2 {
      %cst_10 = arith.constant 0.000000e+00 : f32
      %12 = vector.broadcast %cst_10 : f32 to vector<8x16xf32>
      %c0_11 = arith.constant 0 : index
      %c0_12 = arith.constant 0 : index
      %13 = vector.load %arg6[%c0_11, %c0_12] : memref<8x16xf32, #tpu.memory_space<vmem>>, vector<8x16xf32>
      tpu.vector_store %arg6[%c0_11, %c0_12], %12 {strides = array<i32>} : memref<8x16xf32, #tpu.memory_space<vmem>>, vector<8x16xf32>,
    } else {
    }
    %c0 = arith.constant 0 : index
    %c0_1 = arith.constant 0 : index
    %3 = vector.load %arg3[%c0, %c0_1] : memref<8x32xbf16, #tpu.memory_space<vmem>>, vector<8x32xbf16>
    %c0_2 = arith.constant 0 : index
    %c0_3 = arith.constant 0 : index
    %4 = vector.load %arg6[%c0_2, %c0_3] : memref<8x16xf32, #tpu.memory_space<vmem>>, vector<8x16xf32>
    %c0_4 = arith.constant 0 : index
    %c0_5 = arith.constant 0 : index
    %5 = vector.load %arg4[%c0_4, %c0_5] : memref<16x32xbf16, #tpu.memory_space<vmem>>, vector<16x32xbf16>
    %cst = arith.constant dense<0.000000e+00> : vector<8x16xf32>
    %6 = tpu.matmul %3, %5, %cst {dimension_numbers = #tpu.dot_dimension_numbers<[1], [1], [0], [0], [0, 0, 1, 0], [], []>} : vector<8x32xbf16>, vector<16x32xbf16>, vector<8x16xf32> -> vector<8x16xf32>
    %7 = arith.addf %4, %6 : vector<8x16xf32>
    %c0_6 = arith.constant 0 : index
    %c0_7 = arith.constant 0 : index
    %8 = vector.load %arg6[%c0_6, %c0_7] : memref<8x16xf32, #tpu.memory_space<vmem>>, vector<8x16xf32>
    tpu.vector_store %arg6[%c0_6, %c0_7], %7 {strides = array<i32>} : memref<8x16xf32, #tpu.memory_space<vmem>>, vector<8x16xf32>,
    %c0_i32_8 = arith.constant 0 : i32
    %9 = arith.cmpi eq, %arg2, %c0_i32_8 : i32
    %10 = arith.extui %9 : i1 to i32
    %c0_i32_9 = arith.constant 0 : i32
    %11 = arith.cmpi ne, %10, %c0_i32_9 : i32
    scf.if %11 {
      %c0_10 = arith.constant 0 : index
      %c0_11 = arith.constant 0 : index
      %12 = vector.load %arg6[%c0_10, %c0_11] : memref<8x16xf32, #tpu.memory_space<vmem>>, vector<8x16xf32>
      %c0_12 = arith.constant 0 : index
      %c0_13 = arith.constant 0 : index
      %13 = vector.load %arg5[%c0_12, %c0_13] : memref<1x16xf32, #tpu.memory_space<vmem>>, vector<1x16xf32>
      %14 = vector.broadcast %13 : vector<1x16xf32> to vector<8x16xf32>
      %15 = arith.addf %12, %14 : vector<8x16xf32>
      %c0_14 = arith.constant 0 : index
      %c0_15 = arith.constant 0 : index
      %16 = vector.load %arg6[%c0_14, %c0_15] : memref<8x16xf32, #tpu.memory_space<vmem>>, vector<8x16xf32>
      tpu.vector_store %arg6[%c0_14, %c0_15], %15 {strides = array<i32>} : memref<8x16xf32, #tpu.memory_space<vmem>>, vector<8x16xf32>,
    } else {
    }
    return
  }
  func.func @transform_0(%arg0: i32, %arg1: i32, %arg2: i32) -> (i32, i32) {
    %c0_i32 = arith.constant 0 : i32
    return %arg0, %arg2 : i32, i32
  }
  func.func @transform_1(%arg0: i32, %arg1: i32, %arg2: i32) -> (i32, i32) {
    %c0_i32 = arith.constant 0 : i32
    return %arg1, %arg2 : i32, i32
  }
  func.func @transform_2(%arg0: i32, %arg1: i32, %arg2: i32) -> (i32, i32) {
    %c0_i32 = arith.constant 0 : i32
    %c0_i32_0 = arith.constant 0 : i32
    return %c0_i32, %arg1 : i32, i32
  }
  func.func @transform_3(%arg0: i32, %arg1: i32, %arg2: i32) -> (i32, i32) {
    %c0_i32 = arith.constant 0 : i32
    return %arg0, %arg1 : i32, i32
  }
}

</mosaic_0001>

<bundles_post_ra>
// kernel: tpu_custom_call.1
= control target key start
LH: loop header
LB: loop body
LE: loop exit
PB: predicated region body
PF: predicated region fallthrough
CT: control target
= control target key end

     0   :  { %8 = vsyncpa [#allocation3], 0  ;;  %s263_s0 = inlined_call_operand.hbm [shape: bf16[8,32], index: 0, kind: input, shape index: {}]   ;;  %s264_s1 = inlined_call_operand.hbm [shape: bf16[16,32], index: 1, kind: input, shape index: {}]   ;;  %s265_s2 = inlined_call_operand.vmem [shape: f32[1,16], index: 2, kind: input, shape index: {}]   ;;  %s266_s3 = inlined_call_operand.hbm [shape: f32[8,16], index: 3, kind: output, shape index: {}]  }
   0x1   :  { %9 = vsyncpa [#allocation6], 0 }
   0x2   :  { %10 = vsyncpa [#allocation4], 0  ;;  %s221_s12 = smov [#allocation2]   ;;  %s222_s14 = smov [#allocation5]  }
   0x3   :  { %s17_s13 = sshll.u32 %s221_s12, 4  ;;  %s26_s15 = sshll.u32 %s222_s14, 4  ;;  %s18_s13 = int_to_ptr.vmem [resolvable:$true] %s17_s13  ;;  %s27_s15 = int_to_ptr.vmem [resolvable:$true] %s26_s15 }
   0x4   :  { %s163_s16 = scalar_lea.vmem %s18_s13, 64  ;;  %p168_p1 = scmp.lt.s32.totalorder %s18_s13, %s18_s13 }
   0x5   :  { %p164_p0 = scmp.ne.s32.totalorder %s18_s13, %s163_s16  ;;  %p169_p2 = scmp.lt.s32.totalorder %s163_s16, %s163_s16 }
   0x7   :  { %p170_p3 = por %p169_p2, %p168_p1 }
   0x9   :  { %p171_p4 = pnand %p170_p3, %p164_p0 }
   0xb   :  { %174 = shalt.err (!%p171_p4)
}
   0xc   :  { %20 = dma.hbm_to_vmem [thread:$0]  %s263_s0, 64, %s18_s13, [#allocation3]  }
   0xd   :  { %s183_s19 = scalar_lea.vmem %s27_s15, 128  ;;  %p188_p6 = scmp.lt.s32.totalorder %s27_s15, %s27_s15 }
   0xe   :  { %p184_p5 = scmp.ne.s32.totalorder %s27_s15, %s183_s19  ;;  %p189_p7 = scmp.lt.s32.totalorder %s183_s19, %s183_s19 }
  0x10   :  { %p190_p8 = por %p189_p7, %p188_p6 }
  0x12   :  { %p191_p9 = pnand %p190_p8, %p184_p5 }
  0x14   :  { %194 = shalt.err (!%p191_p9)
}
  0x15   :  { %s223_s20 = smov 64   ;;  %s224_s21 = smov 4  }
  0x16   :  { %32 = dma.hbm_to_vmem [thread:$0]  %s264_s1, 128, %s27_s15, [#allocation6], %s223_s20, %s223_s20, %s224_s21  }
  0x17   :  { %215 = dma.done.wait [#allocation3], 64  }
  0x18   :  { %216 = vsyncadd [#allocation3], 4294967232 }
  0x19   :  { %217 = dma.done.wait [#allocation6], 128  }
  0x1a   :  { %218 = vsyncadd [#allocation6], 4294967168  ;;  %vm46_vm0 = vcmask 130048   ;;  %v225_v0 = vmov 0.0   ;;  %vm226_vm1 = vmmov 0   ;;  %vm57_vm2 = vcmask 261120  }
  0x1b   :  { %47 = vst.msk [vmem:[#allocation7] sm:$0xff] %vm46_vm0, %v225_v0  ;;  %141 = vmatprep.subr.bf16.mxu0 %v225_v0  ;;  %143 = vmatprep.mubr.msk.bf16.mxu0 %vm226_vm1, %v225_v0  ;;  %v154_v1 = vld [vmem:[#allocation5] sm:$0xff]   ;;  %v48_v3 = vld [vmem:[#allocation2] sm:$0xf]  ;;  %s227_s24 = smov [#allocation7]  }
  0x1c   :  { %v62_v2 = vsel %vm57_vm2, %v154_v1, 0  ;;  %v138_v10 = vld [vmem:[%s265_s2] ss:$0 sm:$0xff]  ;;  %s126_s25 = sshll.u32 %s227_s24, 4  ;;  %s127_s25 = int_to_ptr.vmem [resolvable:$true] %s126_s25 }
  0x1d   :  { %142 = vmatpush3.bf16.xpose.msra.mxu0 %v62_v2  ;;  %s195_s26 = scalar_lea.vmem %s127_s25, 128  ;;  %p200_p11 = scmp.lt.s32.totalorder %s127_s25, %s127_s25 }
  0x1e   :  { %p196_p10 = scmp.ne.s32.totalorder %s127_s25, %s195_s26  ;;  %p201_p12 = scmp.lt.s32.totalorder %s195_s26, %s195_s26 }
  0x20   :  { %p202_p13 = por %p201_p12, %p200_p11 }
  0x22   :  { %v49_v4 = vld [vmem:[#allocation7] sm:$0xff]  ;;  %p203_p0 = pnand %p202_p13, %p196_p10 }
  0x24   :  { %144 = vmatmul.mubr.msk.bf16.vlgmr.msra.gmra.mxu0 %vm57_vm2, %v48_v3 }
  0xe4   :  { %v98_v5 = vpop.f32.mrf.mxu0 }
  0xe5   :  { %v104_v6 = vadd.f32 %v98_v5, %v49_v4 }
  0xe6   :  { %v145_v7 = vpop.f32.mrf.mxu0 }
  0xe7   :  { %106 = vst.msk [vmem:[#allocation7] sm:$0xff] %vm46_vm0, %v104_v6 }
  0xe8   :  { %v101_v8 = vpop.f32.mrf.mxu0 }
  0xea   :  { %v146_v9 = vpop.f32.mrf.mxu0 }
  0xee   :  { %v110_v11 = vld [vmem:[#allocation7] sm:$0xff] }
  0xef   :  { %v118_v12 = vadd.f32 %v138_v10, %v110_v11 }
  0xf1   :  { %119 = vst.msk [vmem:[#allocation7] sm:$0xff] %vm46_vm0, %v118_v12 }
  0xf2   :  { %206 = shalt.err (!%p203_p0)
}
  0xf3   :  { %129 = dma.vmem_to_hbm [thread:$0]  %s127_s25, 128, %s266_s3, [#allocation4]  }
  0xf4   :  { %219 = dma.done.wait [#allocation4], 128  }
  0xf5   :  { %220 = vsyncadd [#allocation4], 4294967168 }
  0xf6   :  { %133 = vsyncpa [#allocation3], 1 }
  0xf7   :  { %134 = vsyncpa [#allocation6], 1 }
  0xf8   :  { %135 = vsyncpa [#allocation4], 1 }

</bundles_post_ra>
